<compile_context>
chip_gen: v5e
topology: v5e:2x2
jax: 0.10.0
libtpu: 0.0.40
codegen_flags: <defaults>
</compile_context>

<pallas_src>
import jax
import jax.numpy as jnp
from jax import lax
from jax.experimental import pallas as pl
from jax.experimental.pallas import tpu as pltpu

DEFAULT_VOCAB_PADDING_SIZE = 64


def pad_vocab_size(vocab_size: int, pad_to: int = DEFAULT_VOCAB_PADDING_SIZE) -> int:
    return (vocab_size + pad_to - 1) // pad_to * pad_to


def _cdiv(a: int, b: int) -> int:
    return -(-a // b)


def _ceil_to(x: int, m: int) -> int:
    return _cdiv(x, m) * m


def _physical_vmem_bytes() -> int:
    """Per-TensorCore VMEM capacity; conservative (v7x) fallback if unknown."""
    try:
        info = pltpu.get_tpu_info()
        for attr in ("vmem_capacity_bytes", "vmem_bytes", "vmem_size_bytes"):
            v = getattr(info, attr, None)
            if v:
                return int(v)
    except Exception:
        pass
    return 64 << 20  # v7x per-TensorCore VMEM (smallest of the three gens)


# ----------------------------------------------------------------------------
# Single-pass kernels (K collapsed: tk == D).  One MXU pass per output tile,
# no scratch, no phase gates.
# ----------------------------------------------------------------------------
def _lm_head_fused_kernel(x_ref, w_ref, o_ref):
    # x @ W.T: contract hidden dim (axis 1 of both tiles).  NT contraction
    # maps natively onto the MXU (no XLU transpose of the weight tile).
    o_ref[...] = lax.dot_general(
        x_ref[...], w_ref[...],
        dimension_numbers=(((1,), (1,)), ((), ())),
        preferred_element_type=jnp.float32,
    ).astype(o_ref.dtype)


def _lm_head_fused_bias_kernel(x_ref, w_ref, b_ref, o_ref):
    acc = lax.dot_general(
        x_ref[...], w_ref[...],
        dimension_numbers=(((1,), (1,)), ((), ())),
        preferred_element_type=jnp.float32,
    )
    o_ref[...] = (acc + b_ref[...].astype(jnp.float32)).astype(o_ref.dtype)


# ----------------------------------------------------------------------------
# Split-K fallback kernels: f32 VMEM accumulator, reduction axis last.
# ----------------------------------------------------------------------------
def _lm_head_acc_kernel(x_ref, w_ref, o_ref, acc_ref):
    k = pl.program_id(2)

    @pl.when(k == 0)
    def _():
        acc_ref[...] = jnp.zeros_like(acc_ref)

    acc_ref[...] += lax.dot_general(
        x_ref[...], w_ref[...],
        dimension_numbers=(((1,), (1,)), ((), ())),
        preferred_element_type=jnp.float32,
    )

    @pl.when(k == pl.num_programs(2) - 1)
    def _():
        o_ref[...] = acc_ref[...].astype(o_ref.dtype)


def _lm_head_acc_bias_kernel(x_ref, w_ref, b_ref, o_ref, acc_ref):
    k = pl.program_id(2)

    @pl.when(k == 0)
    def _():
        acc_ref[...] = jnp.zeros_like(acc_ref)

    acc_ref[...] += lax.dot_general(
        x_ref[...], w_ref[...],
        dimension_numbers=(((1,), (1,)), ((), ())),
        preferred_element_type=jnp.float32,
    )

    @pl.when(k == pl.num_programs(2) - 1)
    def _():
        o_ref[...] = (acc_ref[...] + b_ref[...].astype(jnp.float32)).astype(o_ref.dtype)


# ----------------------------------------------------------------------------
# Tile selection.
# ----------------------------------------------------------------------------
def _tile_footprint_bytes(tm, tn, tk, D, x_bytes, w_bytes, o_bytes, b_bytes, use_bias):
    fp = 2 * (tm * tk * x_bytes + tn * tk * w_bytes)   # double-buffered inputs
    fp += 2 * tm * tn * o_bytes                        # double-buffered output
    if use_bias:
        fp += 2 * tn * b_bytes
    if tk != D:
        fp += tm * tn * 4                              # f32 accumulator scratch
    return fp


def _choose_tiles(T, D, V, x_bytes, w_bytes, o_bytes, b_bytes, use_bias, budget):
    def fp(tm_, tn_, tk_):
        return _tile_footprint_bytes(tm_, tn_, tk_, D, x_bytes, w_bytes,
                                     o_bytes, b_bytes, use_bias)

    # Vocab tile: large and 256-aligned (lane-dense unmasked output stores,
    # multi-MiB weight DMAs, full-width v6e/v7x MXU); never degrade below 256.
    tn_cap = max(256, _ceil_to(V, 256))
    tn_cands = [c for c in (1024, 512, 256) if c <= tn_cap] or [256]
    # Token tile: decode keeps the (small) token count; prefill uses 256.
    tm_cands = [T] if T <= 256 else [256, 128]

    # Preferred: collapse the hidden (K) dim entirely -> single MXU pass.
    for tn_ in tn_cands:            # tn is the bigger lever -> keep it large
        for tm_ in tm_cands:
            if fp(tm_, tn_, D) <= budget:
                return tm_, tn_, D
    # Fallback: split K along a 128-multiple divisor of D (f32 accumulator).
    for tn_ in tn_cands:
        for tm_ in tm_cands:
            for tk_ in (2048, 1024, 512, 256, 128):
                if D % tk_ == 0 and fp(tm_, tn_, tk_) <= budget:
                    return tm_, tn_, tk_
    # TODO(synk): D has no 128-multiple divisor that fits the budget
    # (pathological shape); use the smallest single-pass config and rely on
    # the vmem_limit clamp below.
    return min(T, 64), 256, D


# ----------------------------------------------------------------------------
# Public wrapper.
# ----------------------------------------------------------------------------
def parallel_lm_head(x, weight, bias=None, *, tm=None, tn=None, tk=None,
                     vmem_budget_bytes=None):
    """logits = x @ weight.T (+ bias).

    x:      [T, D]   activations (tokens, hidden)
    weight: [V, D]   LM-head weight (padded vocab, hidden)
    bias:   [V] or None
    returns [T, V]
    """
    T, D = x.shape
    V, D2 = weight.shape
    assert D == D2, "hidden dims of x and weight must match"

    use_bias = bias is not None
    out_dtype = x.dtype

    # bf16 weight + f32 activations: feed the MXU bf16 (keep f32 accumulation).
    if weight.dtype == jnp.bfloat16 and x.dtype == jnp.float32:
        x = x.astype(jnp.bfloat16)

    x_bytes = jnp.dtype(x.dtype).itemsize
    w_bytes = jnp.dtype(weight.dtype).itemsize
    o_bytes = jnp.dtype(out_dtype).itemsize
    b_bytes = jnp.dtype(bias.dtype).itemsize if use_bias else 0

    phys_vmem = _physical_vmem_bytes()
    if vmem_budget_bytes is None:
        # ~3/4 of physical: 48 MiB on v7x (64 MiB), 96 MiB on v5e/v6e (128 MiB).
        vmem_budget_bytes = (phys_vmem * 3) // 4

    tm_a, tn_a, tk_a = _choose_tiles(T, D, V, x_bytes, w_bytes, o_bytes,
                                     b_bytes, use_bias, vmem_budget_bytes)
    tm = tm_a if tm is None else tm
    tn = tn_a if tn is None else tn
    tk = tk_a if tk is None else tk
    assert tk == D or D % tk == 0, "tk must divide the hidden dim"

    n_t = _cdiv(T, tm)
    n_v = _cdiv(V, tn)

    if use_bias:
        b2d = bias.reshape(1, V)   # metadata-only reshape

    # Scoped VMEM limit from the actual footprint, clamped below physical.
    fp = _tile_footprint_bytes(tm, tn, tk, D, x_bytes, w_bytes, o_bytes,
                               b_bytes, use_bias)
    vmem_limit = max(int(fp * 3 // 2) + (4 << 20), 32 << 20)
    vmem_limit = min(vmem_limit, 100 << 20, phys_vmem - (8 << 20))

    if tk == D:
        # Single pass.  Grid = (vocab, token): the weight block index is
        # constant over the inner token axis, so each weight tile is DMA'd
        # exactly once; ragged vocab/token tails are masked by Pallas.
        grid = (n_v, n_t)
        in_specs = [
            pl.BlockSpec((tm, D), lambda j, i: (i, 0)),      # x
            pl.BlockSpec((tn, D), lambda j, i: (j, 0)),      # weight
        ]
        operands = [x, weight]
        kernel = _lm_head_fused_kernel
        if use_bias:
            in_specs.append(pl.BlockSpec((1, tn), lambda j, i: (0, j)))
            operands.append(b2d)
            kernel = _lm_head_fused_bias_kernel
        out_specs = pl.BlockSpec((tm, tn), lambda j, i: (i, j))
        scratch_shapes = []
        dim_sem = ("parallel", "parallel")
    else:
        # Split-K fallback: reduction over K on the last grid axis.
        grid = (n_v, n_t, D // tk)
        in_specs = [
            pl.BlockSpec((tm, tk), lambda j, i, k: (i, k)),  # x
            pl.BlockSpec((tn, tk), lambda j, i, k: (j, k)),  # weight
        ]
        operands = [x, weight]
        kernel = _lm_head_acc_kernel
        if use_bias:
            in_specs.append(pl.BlockSpec((1, tn), lambda j, i, k: (0, j)))
            operands.append(b2d)
            kernel = _lm_head_acc_bias_kernel
        out_specs = pl.BlockSpec((tm, tn), lambda j, i, k: (i, j))
        scratch_shapes = [pltpu.VMEM((tm, tn), jnp.float32)]
        dim_sem = ("parallel", "parallel", "arbitrary")

    return pl.pallas_call(
        kernel,
        out_shape=jax.ShapeDtypeStruct((T, V), out_dtype),   # no post-slice
        grid_spec=pltpu.PrefetchScalarGridSpec(
            num_scalar_prefetch=0,
            grid=grid,
            in_specs=in_specs,
            out_specs=out_specs,
            scratch_shapes=scratch_shapes,
        ),
        compiler_params=pltpu.CompilerParams(
            dimension_semantics=dim_sem,
            vmem_limit_bytes=vmem_limit,
        ),
    )(*operands)


if __name__ == "__main__":
    key = jax.random.PRNGKey(0)
    k1, k2, k3, k4, k5, k6, k7 = jax.random.split(key, 7)

    # ------------------------------------------------------------------
    # Test 1: padded vocab, f32, with bias (single-pass path).
    # ------------------------------------------------------------------
    num_embeddings = 1000
    embedding_dim = 128
    V1 = pad_vocab_size(num_embeddings)          # 1024
    T1 = 8

    x1 = jax.random.normal(k1, (T1, embedding_dim), dtype=jnp.float32)
    w_real = jax.random.normal(k2, (num_embeddings, embedding_dim),
                               dtype=jnp.float32) * 0.02
    w1 = jnp.zeros((V1, embedding_dim), jnp.float32).at[:num_embeddings].set(w_real)
    b1 = jax.random.normal(k3, (V1,), jnp.float32) * 0.01

    out1 = jax.block_until_ready(parallel_lm_head(x1, w1, b1))
    ref1 = x1 @ w1.T + b1
    assert out1.shape == (T1, V1)
    assert jnp.allclose(out1, ref1, atol=1e-3, rtol=1e-3)

    # ------------------------------------------------------------------
    # Test 2: no bias, explicit split-K (accumulator) path.
    # ------------------------------------------------------------------
    T2, D2, V2 = 8, 256, 512
    x2 = jax.random.normal(k4, (T2, D2), dtype=jnp.float32)
    w2 = jax.random.normal(k5, (V2, D2), dtype=jnp.float32) * 0.02
    out2 = jax.block_until_ready(parallel_lm_head(x2, w2, None, tk=128))
    ref2 = x2 @ w2.T
    assert out2.shape == (T2, V2)
    assert jnp.allclose(out2, ref2, atol=1e-3, rtol=1e-3)

    # ------------------------------------------------------------------
    # Test 3: ragged vocab (V not a multiple of tn) + bf16 weight with f32
    # activations: exercises the cdiv-grid masked tail and the bf16 MXU path.
    # ------------------------------------------------------------------
    T3, D3 = 16, 128
    V3 = 1216                                     # 19 * 64, not a multiple of 256
    x3 = jax.random.normal(k6, (T3, D3), dtype=jnp.float32)
    w3 = (jax.random.normal(k7, (V3, D3), dtype=jnp.float32) * 0.02
          ).astype(jnp.bfloat16)
    out3 = jax.block_until_ready(parallel_lm_head(x3, w3, None))
    ref3 = x3.astype(jnp.bfloat16).astype(jnp.float32) @ w3.astype(jnp.float32).T
    assert out3.shape == (T3, V3)
    assert out3.dtype == jnp.float32
    assert jnp.allclose(out3, ref3, atol=1e-2, rtol=1e-2)

    print("KERNEL_OK")
</pallas_src>

<mosaic_0001>
module attributes {stable_mosaic.version = 11 : i64} {
  func.func @_lm_head_fused_bias_kernel(%arg0: i32, %arg1: i32, %arg2: memref<8x128xf32, #tpu.memory_space<vmem>>, %arg3: memref<1024x128xf32, #tpu.memory_space<vmem>>, %arg4: memref<1x1024xf32, #tpu.memory_space<vmem>>, %arg5: memref<8x1024xf32, #tpu.memory_space<vmem>>) attributes {dimension_semantics = [#tpu.dimension_semantics<parallel>, #tpu.dimension_semantics<parallel>], iteration_bounds = array<i64: 1, 1>, scalar_prefetch = 0 : i64, scratch_operands = 0 : i64, tpu.core_type = #tpu.core_type<tc>, window_params = [{transform_indices = @transform_0, window_bounds = array<i64: 8, 128>}, {transform_indices = @transform_1, window_bounds = array<i64: 1024, 128>}, {transform_indices = @transform_2, window_bounds = array<i64: 1, 1024>}, {transform_indices = @transform_3, window_bounds = array<i64: 8, 1024>}]} {
    %c0 = arith.constant 0 : index
    %c0_0 = arith.constant 0 : index
    %0 = vector.load %arg2[%c0, %c0_0] : memref<8x128xf32, #tpu.memory_space<vmem>>, vector<8x128xf32>
    %c0_1 = arith.constant 0 : index
    %c0_2 = arith.constant 0 : index
    %1 = vector.load %arg3[%c0_1, %c0_2] : memref<1024x128xf32, #tpu.memory_space<vmem>>, vector<1024x128xf32>
    %cst = arith.constant dense<0.000000e+00> : vector<8x1024xf32>
    %2 = tpu.matmul %0, %1, %cst {dimension_numbers = #tpu.dot_dimension_numbers<[1], [1], [0], [0], [0, 0, 1, 0], [], []>} : vector<8x128xf32>, vector<1024x128xf32>, vector<8x1024xf32> -> vector<8x1024xf32>
    %c0_3 = arith.constant 0 : index
    %c0_4 = arith.constant 0 : index
    %3 = vector.load %arg4[%c0_3, %c0_4] : memref<1x1024xf32, #tpu.memory_space<vmem>>, vector<1x1024xf32>
    %4 = vector.broadcast %3 : vector<1x1024xf32> to vector<8x1024xf32>
    %5 = arith.addf %2, %4 : vector<8x1024xf32>
    %c0_5 = arith.constant 0 : index
    %c0_6 = arith.constant 0 : index
    %6 = vector.load %arg5[%c0_5, %c0_6] : memref<8x1024xf32, #tpu.memory_space<vmem>>, vector<8x1024xf32>
    tpu.vector_store %arg5[%c0_5, %c0_6], %5 {strides = array<i32>} : memref<8x1024xf32, #tpu.memory_space<vmem>>, vector<8x1024xf32>,
    return
  }
  func.func @transform_0(%arg0: i32, %arg1: i32) -> (i32, i32) {
    %c0_i32 = arith.constant 0 : i32
    %c0_i32_0 = arith.constant 0 : i32
    return %arg1, %c0_i32 : i32, i32
  }
  func.func @transform_1(%arg0: i32, %arg1: i32) -> (i32, i32) {
    %c0_i32 = arith.constant 0 : i32
    %c0_i32_0 = arith.constant 0 : i32
    return %arg0, %c0_i32 : i32, i32
  }
  func.func @transform_2(%arg0: i32, %arg1: i32) -> (i32, i32) {
    %c0_i32 = arith.constant 0 : i32
    %c0_i32_0 = arith.constant 0 : i32
    return %c0_i32, %arg0 : i32, i32
  }
  func.func @transform_3(%arg0: i32, %arg1: i32) -> (i32, i32) {
    %c0_i32 = arith.constant 0 : i32
    return %arg1, %arg0 : i32, i32
  }
}

</mosaic_0001>

<bundles_post_ra>
// kernel: tpu_custom_call.1
= control target key start
LH: loop header
LB: loop body
LE: loop exit
PB: predicated region body
PF: predicated region fallthrough
CT: control target
= control target key end

     0   :  { %8 = vsyncpa [#allocation3], 0  ;;  %s547_s0 = inlined_call_operand.hbm [shape: f32[8,128], index: 0, kind: input, shape index: {}]   ;;  %s548_s1 = inlined_call_operand.hbm [shape: f32[1024,128], index: 1, kind: input, shape index: {}]   ;;  %s549_s2 = inlined_call_operand.hbm [shape: f32[1,1024], index: 2, kind: input, shape index: {}]   ;;  %s550_s3 = inlined_call_operand.hbm [shape: f32[8,1024], index: 3, kind: output, shape index: {}]  }
   0x1   :  { %9 = vsyncpa [#allocation6], 0  ;;  %s26_s14 = sshll.u32 %s548_s1, 4  ;;  %s27_s14 = int_to_ptr.hbm [resolvable:$true] %s26_s14 }
   0x2   :  { %10 = vsyncpa [#allocation4], 0  ;;  %s499_s15 = smov [#allocation5]   ;;  %s16_s19 = sshll.u32 %s547_s0, 4  ;;  %s17_s19 = int_to_ptr.hbm [resolvable:$true] %s16_s19 }
   0x3   :  { %s28_s16 = sshll.u32 %s499_s15, 4  ;;  %s500_s20 = smov 128   ;;  %s29_s16 = int_to_ptr.vmem [resolvable:$true] %s28_s16 }
   0x4   :  { %s501_s21 = smov 8   ;;  %s502_s22 = smov [#allocation2]  }
   0x5   :  { %34 = dma.hbm_to_vmem [thread:$0]  %s27_s14, 16384, %s29_s16, [#allocation6], %s500_s20, %s500_s20, %s501_s21  }
   0x6   :  { %s18_s23 = sshll.u32 %s502_s22, 4  ;;  %s40_s26 = sshll.u32 %s549_s2, 4  ;;  %s19_s23 = int_to_ptr.vmem [resolvable:$true] %s18_s23  ;;  %s41_s26 = int_to_ptr.hbm [resolvable:$true] %s40_s26 }
   0x7   :  { %21 = dma.hbm_to_vmem [thread:$0]  %s17_s19, 128, %s19_s23, [#allocation3]  }
   0x8   :  { %s503_s1 = smov [#allocation7]  }
   0x9   :  { %s42_s27 = sshll.u32 %s503_s1, 4  ;;  %s43_s27 = int_to_ptr.vmem [resolvable:$true] %s42_s27 }
   0xa   :  { %45 = dma.hbm_to_vmem [thread:$0]  %s41_s26, 128, %s43_s27, [#allocation6]  }
   0xb   :  { %493 = dma.done.wait [#allocation3], 128  }
   0xc   :  { %494 = vsyncadd [#allocation3], 4294967168 }
   0xd   :  { %495 = dma.done.wait [#allocation6], 16512  }
   0xe   :  { %496 = vsyncadd [#allocation6], 4294950784  ;;  %v106_v0 = vld [vmem:[#allocation5 + $0x178] sm:$0xff]  ;;  %v105_v4 = vld [vmem:[#allocation5 + $0x170] sm:$0xff]  ;;  %s504_s0 = smov [#allocation8]   ;;  %s380_s30 = sshll.u32 %s550_s3, 4  ;;  %s381_s30 = int_to_ptr.hbm [resolvable:$true] %s380_s30 }
   0xf   :  { %v122_v1 = vld [vmem:[#allocation5 + $0x1f8] sm:$0xff]  ;;  %245 = vmatpush.xpose.msra.mxu2 %v106_v0  ;;  %v121_v5 = vld [vmem:[#allocation5 + $0x1f0] sm:$0xff]  ;;  %v104_v8 = vld [vmem:[#allocation5 + $0x168] sm:$0xff]  ;;  %s378_s2 = sshll.u32 %s504_s0, 4  ;;  %s379_s2 = int_to_ptr.vmem [resolvable:$true] %s378_s2 }
  0x10   :  { %265 = vmatpush.xpose.msra.mxu3 %v122_v1  ;;  %v74_v2 = vld [vmem:[#allocation5 + $0x78] sm:$0xff]  ;;  %v73_v6 = vld [vmem:[#allocation5 + $0x70] sm:$0xff]  ;;  %v120_v9 = vld [vmem:[#allocation5 + $0x1e8] sm:$0xff] }
  0x11   :  { %v90_v3 = vld [vmem:[#allocation5 + $0xf8] sm:$0xff]  ;;  %205 = vmatpush.xpose.msra.mxu0 %v74_v2  ;;  %v89_v7 = vld [vmem:[#allocation5 + $0xf0] sm:$0xff]  ;;  %v72_v10 = vld [vmem:[#allocation5 + $0x68] sm:$0xff] }
  0x12   :  { %225 = vmatpush.xpose.msra.mxu1 %v90_v3  ;;  %v88_v11 = vld [vmem:[#allocation5 + $0xe8] sm:$0xff]  ;;  %v103_v12 = vld [vmem:[#allocation5 + $0x160] sm:$0xff]  ;;  %v102_v16 = vld [vmem:[#allocation5 + $0x158] sm:$0xff] }
  0x13   :  { %246 = vmatpush.xpose.msra.mxu2 %v105_v4  ;;  %v119_v13 = vld [vmem:[#allocation5 + $0x1e0] sm:$0xff]  ;;  %v118_v17 = vld [vmem:[#allocation5 + $0x1d8] sm:$0xff]  ;;  %v101_v20 = vld [vmem:[#allocation5 + $0x150] sm:$0xff] }
  0x14   :  { %266 = vmatpush.xpose.msra.mxu3 %v121_v5  ;;  %v71_v14 = vld [vmem:[#allocation5 + $0x60] sm:$0xff]  ;;  %v70_v18 = vld [vmem:[#allocation5 + $0x58] sm:$0xff]  ;;  %v117_v21 = vld [vmem:[#allocation5 + $0x1d0] sm:$0xff] }
  0x15   :  { %206 = vmatpush.xpose.msra.mxu0 %v73_v6  ;;  %v87_v15 = vld [vmem:[#allocation5 + $0xe0] sm:$0xff]  ;;  %v86_v19 = vld [vmem:[#allocation5 + $0xd8] sm:$0xff]  ;;  %v69_v22 = vld [vmem:[#allocation5 + $0x50] sm:$0xff] }
  0x16   :  { %226 = vmatpush.xpose.msra.mxu1 %v89_v7  ;;  %v85_v23 = vld [vmem:[#allocation5 + $0xd0] sm:$0xff]  ;;  %v100_v24 = vld [vmem:[#allocation5 + $0x148] sm:$0xff]  ;;  %v99_v28 = vld [vmem:[#allocation5 + $0x140] sm:$0xff] }
  0x17   :  { %247 = vmatpush.xpose.msra.mxu2 %v104_v8  ;;  %v116_v25 = vld [vmem:[#allocation5 + $0x1c8] sm:$0xff]  ;;  %v115_v29 = vld [vmem:[#allocation5 + $0x1c0] sm:$0xff]  ;;  %v98_v32 = vld [vmem:[#allocation5 + $0x138] sm:$0xff] }
  0x18   :  { %267 = vmatpush.xpose.msra.mxu3 %v120_v9  ;;  %v68_v26 = vld [vmem:[#allocation5 + $0x48] sm:$0xff]  ;;  %v67_v30 = vld [vmem:[#allocation5 + $0x40] sm:$0xff]  ;;  %v114_v33 = vld [vmem:[#allocation5 + $0x1b8] sm:$0xff] }
  0x19   :  { %207 = vmatpush.xpose.msra.mxu0 %v72_v10  ;;  %v84_v27 = vld [vmem:[#allocation5 + $0xc8] sm:$0xff]  ;;  %v83_v31 = vld [vmem:[#allocation5 + $0xc0] sm:$0xff]  ;;  %v66_v34 = vld [vmem:[#allocation5 + $0x38] sm:$0xff] }
  0x1a   :  { %227 = vmatpush.xpose.msra.mxu1 %v88_v11  ;;  %v82_v35 = vld [vmem:[#allocation5 + $0xb8] sm:$0xff]  ;;  %v97_v36 = vld [vmem:[#allocation5 + $0x130] sm:$0xff]  ;;  %v96_v40 = vld [vmem:[#allocation5 + $0x128] sm:$0xff] }
  0x1b   :  { %248 = vmatpush.xpose.msra.mxu2 %v103_v12  ;;  %v113_v37 = vld [vmem:[#allocation5 + $0x1b0] sm:$0xff]  ;;  %v112_v41 = vld [vmem:[#allocation5 + $0x1a8] sm:$0xff]  ;;  %v95_v44 = vld [vmem:[#allocation5 + $0x120] sm:$0xff] }
  0x1c   :  { %268 = vmatpush.xpose.msra.mxu3 %v119_v13  ;;  %v65_v38 = vld [vmem:[#allocation5 + $0x30] sm:$0xff]  ;;  %v64_v42 = vld [vmem:[#allocation5 + $0x28] sm:$0xff]  ;;  %v111_v45 = vld [vmem:[#allocation5 + $0x1a0] sm:$0xff] }
  0x1d   :  { %208 = vmatpush.xpose.msra.mxu0 %v71_v14  ;;  %v81_v39 = vld [vmem:[#allocation5 + $0xb0] sm:$0xff]  ;;  %v80_v43 = vld [vmem:[#allocation5 + $0xa8] sm:$0xff]  ;;  %v63_v46 = vld [vmem:[#allocation5 + $0x20] sm:$0xff] }
  0x1e   :  { %228 = vmatpush.xpose.msra.mxu1 %v87_v15  ;;  %v79_v47 = vld [vmem:[#allocation5 + $0xa0] sm:$0xff]  ;;  %v94_v48 = vld [vmem:[#allocation5 + $0x118] sm:$0xff]  ;;  %v93_v52 = vld [vmem:[#allocation5 + $0x110] sm:$0xff] }
  0x1f   :  { %249 = vmatpush.xpose.msra.mxu2 %v102_v16  ;;  %v110_v49 = vld [vmem:[#allocation5 + $0x198] sm:$0xff]  ;;  %v109_v53 = vld [vmem:[#allocation5 + $0x190] sm:$0xff]  ;;  %v92_v56 = vld [vmem:[#allocation5 + $0x108] sm:$0xff] }
  0x20   :  { %269 = vmatpush.xpose.msra.mxu3 %v118_v17  ;;  %v62_v50 = vld [vmem:[#allocation5 + $0x18] sm:$0xff]  ;;  %v61_v54 = vld [vmem:[#allocation5 + $0x10] sm:$0xff]  ;;  %v108_v57 = vld [vmem:[#allocation5 + $0x188] sm:$0xff] }
  0x21   :  { %209 = vmatpush.xpose.msra.mxu0 %v70_v18  ;;  %v78_v51 = vld [vmem:[#allocation5 + $0x98] sm:$0xff]  ;;  %v77_v55 = vld [vmem:[#allocation5 + $0x90] sm:$0xff]  ;;  %v60_v58 = vld [vmem:[#allocation5 + $0x8] sm:$0xff] }
  0x22   :  { %229 = vmatpush.xpose.msra.mxu1 %v86_v19  ;;  %v76_v59 = vld [vmem:[#allocation5 + $0x88] sm:$0xff]  ;;  %v91_v60 = vld [vmem:[#allocation5 + $0x100] sm:$0xff]  ;;  %v170_v62 = vld [vmem:[#allocation5 + $0x378] sm:$0xff] }
  0x23   :  { %250 = vmatpush.xpose.msra.mxu2 %v101_v20  ;;  %v107_v61 = vld [vmem:[#allocation5 + $0x180] sm:$0xff]  ;;  %v186_v63 = vld [vmem:[#allocation5 + $0x3f8] sm:$0xff]  ;;  %v169_v4 = vld [vmem:[#allocation5 + $0x370] sm:$0xff] }
  0x24   :  { %270 = vmatpush.xpose.msra.mxu3 %v117_v21  ;;  %v59_v0 = vld [vmem:[#allocation5] sm:$0xff]  ;;  %v138_v2 = vld [vmem:[#allocation5 + $0x278] sm:$0xff]  ;;  %v185_v5 = vld [vmem:[#allocation5 + $0x3f0] sm:$0xff] }
  0x25   :  { %210 = vmatpush.xpose.msra.mxu0 %v69_v22  ;;  %v75_v1 = vld [vmem:[#allocation5 + $0x80] sm:$0xff]  ;;  %v154_v3 = vld [vmem:[#allocation5 + $0x2f8] sm:$0xff]  ;;  %v137_v6 = vld [vmem:[#allocation5 + $0x270] sm:$0xff] }
  0x26   :  { %230 = vmatpush.xpose.msra.mxu1 %v85_v23  ;;  %v153_v7 = vld [vmem:[#allocation5 + $0x2f0] sm:$0xff]  ;;  %v168_v8 = vld [vmem:[#allocation5 + $0x368] sm:$0xff]  ;;  %v167_v12 = vld [vmem:[#allocation5 + $0x360] sm:$0xff] }
  0x27   :  { %251 = vmatpush.xpose.msra.mxu2 %v100_v24  ;;  %v184_v9 = vld [vmem:[#allocation5 + $0x3e8] sm:$0xff]  ;;  %v183_v13 = vld [vmem:[#allocation5 + $0x3e0] sm:$0xff]  ;;  %v166_v16 = vld [vmem:[#allocation5 + $0x358] sm:$0xff] }
  0x28   :  { %271 = vmatpush.xpose.msra.mxu3 %v116_v25  ;;  %v136_v10 = vld [vmem:[#allocation5 + $0x268] sm:$0xff]  ;;  %v135_v14 = vld [vmem:[#allocation5 + $0x260] sm:$0xff]  ;;  %v182_v17 = vld [vmem:[#allocation5 + $0x3d8] sm:$0xff] }
  0x29   :  { %211 = vmatpush.xpose.msra.mxu0 %v68_v26  ;;  %v152_v11 = vld [vmem:[#allocation5 + $0x2e8] sm:$0xff]  ;;  %v151_v15 = vld [vmem:[#allocation5 + $0x2e0] sm:$0xff]  ;;  %v134_v18 = vld [vmem:[#allocation5 + $0x258] sm:$0xff] }
  0x2a   :  { %231 = vmatpush.xpose.msra.mxu1 %v84_v27  ;;  %v150_v19 = vld [vmem:[#allocation5 + $0x2d8] sm:$0xff]  ;;  %v165_v20 = vld [vmem:[#allocation5 + $0x350] sm:$0xff]  ;;  %v164_v25 = vld [vmem:[#allocation5 + $0x348] sm:$0xff] }
  0x2b   :  { %252 = vmatpush.xpose.msra.mxu2 %v99_v28  ;;  %v181_v21 = vld [vmem:[#allocation5 + $0x3d0] sm:$0xff]  ;;  %v534_v24 = vld [vmem:[#allocation2] sm:$0xff]  ;;  %v180_v26 = vld [vmem:[#allocation5 + $0x3c8] sm:$0xff] }
  0x2c   :  { %272 = vmatpush.xpose.msra.mxu3 %v115_v29  ;;  %v133_v22 = vld [vmem:[#allocation5 + $0x250] sm:$0xff]  ;;  %v132_v27 = vld [vmem:[#allocation5 + $0x248] sm:$0xff]  ;;  %v163_v29 = vld [vmem:[#allocation5 + $0x340] sm:$0xff] }
  0x2d   :  { %212 = vmatpush.xpose.msra.mxu0 %v67_v30  ;;  %v149_v23 = vld [vmem:[#allocation5 + $0x2d0] sm:$0xff]  ;;  %v148_v28 = vld [vmem:[#allocation5 + $0x2c8] sm:$0xff]  ;;  %v179_v30 = vld [vmem:[#allocation5 + $0x3c0] sm:$0xff] }
  0x2e   :  { %232 = vmatpush.xpose.msra.mxu1 %v83_v31  ;;  %v131_v31 = vld [vmem:[#allocation5 + $0x240] sm:$0xff] }
  0x2f   :  { %253 = vmatpush.xpose.msra.mxu2 %v98_v32  ;;  %v147_v32 = vld [vmem:[#allocation5 + $0x2c0] sm:$0xff] }
  0x30   :  { %273 = vmatpush.xpose.msra.mxu3 %v114_v33  ;;  %v162_v33 = vld [vmem:[#allocation5 + $0x338] sm:$0xff] }
  0x31   :  { %213 = vmatpush.xpose.msra.mxu0 %v66_v34  ;;  %v178_v34 = vld [vmem:[#allocation5 + $0x3b8] sm:$0xff] }
  0x32   :  { %233 = vmatpush.xpose.msra.mxu1 %v82_v35  ;;  %v130_v35 = vld [vmem:[#allocation5 + $0x238] sm:$0xff] }
  0x33   :  { %254 = vmatpush.xpose.msra.mxu2 %v97_v36  ;;  %v146_v36 = vld [vmem:[#allocation5 + $0x2b8] sm:$0xff] }
  0x34   :  { %274 = vmatpush.xpose.msra.mxu3 %v113_v37  ;;  %v161_v37 = vld [vmem:[#allocation5 + $0x330] sm:$0xff] }
  0x35   :  { %214 = vmatpush.xpose.msra.mxu0 %v65_v38  ;;  %v177_v38 = vld [vmem:[#allocation5 + $0x3b0] sm:$0xff] }
  0x36   :  { %234 = vmatpush.xpose.msra.mxu1 %v81_v39  ;;  %v129_v39 = vld [vmem:[#allocation5 + $0x230] sm:$0xff] }
  0x37   :  { %255 = vmatpush.xpose.msra.mxu2 %v96_v40  ;;  %v145_v40 = vld [vmem:[#allocation5 + $0x2b0] sm:$0xff] }
  0x38   :  { %275 = vmatpush.xpose.msra.mxu3 %v112_v41  ;;  %v160_v41 = vld [vmem:[#allocation5 + $0x328] sm:$0xff] }
  0x39   :  { %215 = vmatpush.xpose.msra.mxu0 %v64_v42  ;;  %v176_v42 = vld [vmem:[#allocation5 + $0x3a8] sm:$0xff] }
  0x3a   :  { %235 = vmatpush.xpose.msra.mxu1 %v80_v43  ;;  %v128_v43 = vld [vmem:[#allocation5 + $0x228] sm:$0xff] }
  0x3b   :  { %256 = vmatpush.xpose.msra.mxu2 %v95_v44  ;;  %v144_v44 = vld [vmem:[#allocation5 + $0x2a8] sm:$0xff] }
  0x3c   :  { %276 = vmatpush.xpose.msra.mxu3 %v111_v45  ;;  %v159_v45 = vld [vmem:[#allocation5 + $0x320] sm:$0xff] }
  0x3d   :  { %216 = vmatpush.xpose.msra.mxu0 %v63_v46  ;;  %v175_v46 = vld [vmem:[#allocation5 + $0x3a0] sm:$0xff] }
  0x3e   :  { %236 = vmatpush.xpose.msra.mxu1 %v79_v47  ;;  %v127_v47 = vld [vmem:[#allocation5 + $0x220] sm:$0xff] }
  0x3f   :  { %257 = vmatpush.xpose.msra.mxu2 %v94_v48  ;;  %v143_v48 = vld [vmem:[#allocation5 + $0x2a0] sm:$0xff] }
  0x40   :  { %277 = vmatpush.xpose.msra.mxu3 %v110_v49  ;;  %v158_v49 = vld [vmem:[#allocation5 + $0x318] sm:$0xff] }
  0x41   :  { %217 = vmatpush.xpose.msra.mxu0 %v62_v50  ;;  %v174_v50 = vld [vmem:[#allocation5 + $0x398] sm:$0xff] }
  0x42   :  { %237 = vmatpush.xpose.msra.mxu1 %v78_v51  ;;  %v126_v51 = vld [vmem:[#allocation5 + $0x218] sm:$0xff] }
  0x43   :  { %258 = vmatpush.xpose.msra.mxu2 %v93_v52  ;;  %v142_v52 = vld [vmem:[#allocation5 + $0x298] sm:$0xff] }
  0x44   :  { %278 = vmatpush.xpose.msra.mxu3 %v109_v53  ;;  %v157_v53 = vld [vmem:[#allocation5 + $0x310] sm:$0xff] }
  0x45   :  { %218 = vmatpush.xpose.msra.mxu0 %v61_v54  ;;  %v173_v54 = vld [vmem:[#allocation5 + $0x390] sm:$0xff] }
  0x46   :  { %238 = vmatpush.xpose.msra.mxu1 %v77_v55  ;;  %v125_v55 = vld [vmem:[#allocation5 + $0x210] sm:$0xff] }
  0x47   :  { %259 = vmatpush.xpose.msra.mxu2 %v92_v56  ;;  %v141_v56 = vld [vmem:[#allocation5 + $0x290] sm:$0xff] }
  0x48   :  { %279 = vmatpush.xpose.msra.mxu3 %v108_v57  ;;  %v156_v57 = vld [vmem:[#allocation5 + $0x308] sm:$0xff] }
  0x49   :  { %219 = vmatpush.xpose.msra.mxu0 %v60_v58  ;;  %v172_v58 = vld [vmem:[#allocation5 + $0x388] sm:$0xff] }
  0x4a   :  { %239 = vmatpush.xpose.msra.mxu1 %v76_v59  ;;  %v124_v59 = vld [vmem:[#allocation5 + $0x208] sm:$0xff] }
  0x4b   :  { %260 = vmatpush.xpose.msra.mxu2 %v91_v60  ;;  %v140_v60 = vld [vmem:[#allocation5 + $0x288] sm:$0xff] }
  0x4c   :  { %280 = vmatpush.xpose.msra.mxu3 %v107_v61  ;;  %v155_v61 = vld [vmem:[#allocation5 + $0x300] sm:$0xff] }
  0x4d   :  { %220 = vmatpush.xpose.msra.mxu0 %v59_v0  ;;  %v139_v0 = vld [vmem:[#allocation5 + $0x280] sm:$0xff] }
  0x4e   :  { %240 = vmatpush.xpose.msra.mxu1 %v75_v1  ;;  %261 = vmatmul.f32.vlgmr.msra.gmra.mxu2 %v534_v24  ;;  %v187_v1 = vld [vmem:[#allocation7] sm:$0xff] }
  0x4f   :  { %325 = vmatpush.xpose.msrb.mxu2 %v170_v62  ;;  %281 = vmatmul.f32.vlgmr.msra.gmra.mxu3 %v534_v24  ;;  %v171_v62 = vld [vmem:[#allocation5 + $0x380] sm:$0xff] }
  0x50   :  { %345 = vmatpush.xpose.msrb.mxu3 %v186_v63  ;;  %221 = vmatmul.f32.vlgmr.msra.gmra.mxu0 %v534_v24  ;;  %v123_v63 = vld [vmem:[#allocation5 + $0x200] sm:$0xff] }
  0x51   :  { %285 = vmatpush.xpose.msrb.mxu0 %v138_v2  ;;  %241 = vmatmul.f32.vlgmr.msra.gmra.mxu1 %v534_v24  ;;  %v189_v2 = vperm.slane %v187_v1, 0 }
  0x52   :  { %305 = vmatpush.xpose.msrb.mxu1 %v154_v3  ;;  %v190_v3 = vperm.slane %v187_v1, 1 }
  0x53   :  { %326 = vmatpush.xpose.msrb.mxu2 %v169_v4 }
  0x54   :  { %346 = vmatpush.xpose.msrb.mxu3 %v185_v5 }
  0x55   :  { %286 = vmatpush.xpose.msrb.mxu0 %v137_v6 }
  0x56   :  { %306 = vmatpush.xpose.msrb.mxu1 %v153_v7 }
  0x57   :  { %327 = vmatpush.xpose.msrb.mxu2 %v168_v8  ;;  %v191_v8 = vperm.slane %v187_v1, 2 }
  0x58   :  { %347 = vmatpush.xpose.msrb.mxu3 %v184_v9  ;;  %v192_v9 = vperm.slane %v187_v1, 3 }
  0x59   :  { %287 = vmatpush.xpose.msrb.mxu0 %v136_v10 }
  0x5a   :  { %307 = vmatpush.xpose.msrb.mxu1 %v152_v11 }
  0x5b   :  { %328 = vmatpush.xpose.msrb.mxu2 %v167_v12 }
  0x5c   :  { %348 = vmatpush.xpose.msrb.mxu3 %v183_v13 }
  0x5d   :  { %288 = vmatpush.xpose.msrb.mxu0 %v135_v14  ;;  %v193_v14 = vperm.slane %v187_v1, 4 }
  0x5e   :  { %308 = vmatpush.xpose.msrb.mxu1 %v151_v15  ;;  %v194_v15 = vperm.slane %v187_v1, 5 }
  0x5f   :  { %329 = vmatpush.xpose.msrb.mxu2 %v166_v16 }
  0x60   :  { %349 = vmatpush.xpose.msrb.mxu3 %v182_v17 }
  0x61   :  { %289 = vmatpush.xpose.msrb.mxu0 %v134_v18 }
  0x62   :  { %309 = vmatpush.xpose.msrb.mxu1 %v150_v19 }
  0x63   :  { %330 = vmatpush.xpose.msrb.mxu2 %v165_v20  ;;  %v195_v20 = vperm.slane %v187_v1, 6 }
  0x64   :  { %350 = vmatpush.xpose.msrb.mxu3 %v181_v21  ;;  %v196_v21 = vperm.slane %v187_v1, 7 }
  0x65   :  { %290 = vmatpush.xpose.msrb.mxu0 %v133_v22 }
  0x66   :  { %310 = vmatpush.xpose.msrb.mxu1 %v149_v23 }
  0x67   :  { %331 = vmatpush.xpose.msrb.mxu2 %v164_v25 }
  0x68   :  { %351 = vmatpush.xpose.msrb.mxu3 %v180_v26 }
  0x69   :  { %291 = vmatpush.xpose.msrb.mxu0 %v132_v27 }
  0x6a   :  { %311 = vmatpush.xpose.msrb.mxu1 %v148_v28 }
  0x6b   :  { %332 = vmatpush.xpose.msrb.mxu2 %v163_v29 }
  0x6c   :  { %352 = vmatpush.xpose.msrb.mxu3 %v179_v30 }
  0x6d   :  { %292 = vmatpush.xpose.msrb.mxu0 %v131_v31 }
  0x6e   :  { %312 = vmatpush.xpose.msrb.mxu1 %v147_v32 }
  0x6f   :  { %333 = vmatpush.xpose.msrb.mxu2 %v162_v33 }
  0x70   :  { %353 = vmatpush.xpose.msrb.mxu3 %v178_v34 }
  0x71   :  { %293 = vmatpush.xpose.msrb.mxu0 %v130_v35 }
  0x72   :  { %313 = vmatpush.xpose.msrb.mxu1 %v146_v36 }
  0x73   :  { %334 = vmatpush.xpose.msrb.mxu2 %v161_v37 }
  0x74   :  { %354 = vmatpush.xpose.msrb.mxu3 %v177_v38 }
  0x75   :  { %294 = vmatpush.xpose.msrb.mxu0 %v129_v39 }
  0x76   :  { %314 = vmatpush.xpose.msrb.mxu1 %v145_v40 }
  0x77   :  { %335 = vmatpush.xpose.msrb.mxu2 %v160_v41 }
  0x78   :  { %355 = vmatpush.xpose.msrb.mxu3 %v176_v42 }
  0x79   :  { %295 = vmatpush.xpose.msrb.mxu0 %v128_v43 }
  0x7a   :  { %315 = vmatpush.xpose.msrb.mxu1 %v144_v44 }
  0x7b   :  { %336 = vmatpush.xpose.msrb.mxu2 %v159_v45 }
  0x7c   :  { %356 = vmatpush.xpose.msrb.mxu3 %v175_v46 }
  0x7d   :  { %296 = vmatpush.xpose.msrb.mxu0 %v127_v47 }
  0x7e   :  { %316 = vmatpush.xpose.msrb.mxu1 %v143_v48 }
  0x7f   :  { %337 = vmatpush.xpose.msrb.mxu2 %v158_v49 }
  0x80   :  { %357 = vmatpush.xpose.msrb.mxu3 %v174_v50 }
  0x81   :  { %297 = vmatpush.xpose.msrb.mxu0 %v126_v51 }
  0x82   :  { %317 = vmatpush.xpose.msrb.mxu1 %v142_v52 }
  0x83   :  { %338 = vmatpush.xpose.msrb.mxu2 %v157_v53 }
  0x84   :  { %358 = vmatpush.xpose.msrb.mxu3 %v173_v54 }
  0x85   :  { %298 = vmatpush.xpose.msrb.mxu0 %v125_v55 }
  0x86   :  { %318 = vmatpush.xpose.msrb.mxu1 %v141_v56 }
  0x87   :  { %339 = vmatpush.xpose.msrb.mxu2 %v156_v57 }
  0x88   :  { %359 = vmatpush.xpose.msrb.mxu3 %v172_v58 }
  0x89   :  { %299 = vmatpush.xpose.msrb.mxu0 %v124_v59 }
  0x8a   :  { %319 = vmatpush.xpose.msrb.mxu1 %v140_v60 }
  0x8b   :  { %340 = vmatpush.xpose.msrb.mxu2 %v155_v61 }
  0x8c   :  { %360 = vmatpush.xpose.msrb.mxu3 %v171_v62 }
  0x8d   :  { %300 = vmatpush.xpose.msrb.mxu0 %v123_v63 }
  0x8e   :  { %320 = vmatpush.xpose.msrb.mxu1 %v139_v0  ;;  %341 = vmatmul.f32.vlgmr.msrb.gmra.mxu2 %v534_v24 }
  0x8f   :  { %361 = vmatmul.f32.vlgmr.msrb.gmra.mxu3 %v534_v24 }
  0x90   :  { %301 = vmatmul.f32.vlgmr.msrb.gmra.mxu0 %v534_v24 }
  0x91   :  { %321 = vmatmul.f32.vlgmr.msrb.gmra.mxu1 %v534_v24 }
  0xcd   :  { %v222_v4 = vpop.f32.mrf.mxu0 }
  0xce   :  { %v242_v5 = vpop.f32.mrf.mxu1  ;;  %v223_v6 = vadd.f32 %v222_v4, %v189_v2 }
  0xcf   :  { %v243_v7 = vadd.f32 %v242_v5, %v190_v3 }
  0xd0   :  { %365 = vst [vmem:[#allocation8] sm:$0xff] %v223_v6 }
  0xd1   :  { %366 = vst [vmem:[#allocation8 + $0x8] sm:$0xff] %v243_v7  ;;  %v262_v10 = vpop.f32.mrf.mxu2 }
  0xd2   :  { %v282_v11 = vpop.f32.mrf.mxu3  ;;  %v263_v12 = vadd.f32 %v262_v10, %v191_v8 }
  0xd3   :  { %v283_v13 = vadd.f32 %v282_v11, %v192_v9 }
  0xd4   :  { %367 = vst [vmem:[#allocation8 + $0x10] sm:$0xff] %v263_v12 }
  0xd5   :  { %368 = vst [vmem:[#allocation8 + $0x18] sm:$0xff] %v283_v13 }
 0x10d   :  { %v302_v16 = vpop.f32.mrf.mxu0 }
 0x10e   :  { %v322_v17 = vpop.f32.mrf.mxu1  ;;  %v303_v18 = vadd.f32 %v302_v16, %v193_v14 }
 0x10f   :  { %v323_v19 = vadd.f32 %v322_v17, %v194_v15 }
 0x110   :  { %369 = vst [vmem:[#allocation8 + $0x20] sm:$0xff] %v303_v18 }
 0x111   :  { %370 = vst [vmem:[#allocation8 + $0x28] sm:$0xff] %v323_v19  ;;  %v342_v22 = vpop.f32.mrf.mxu2 }
 0x112   :  { %v362_v23 = vpop.f32.mrf.mxu3  ;;  %v343_v24 = vadd.f32 %v342_v22, %v195_v20 }
 0x113   :  { %v363_v25 = vadd.f32 %v362_v23, %v196_v21 }
 0x114   :  { %371 = vst [vmem:[#allocation8 + $0x30] sm:$0xff] %v343_v24 }
 0x115   :  { %372 = vst [vmem:[#allocation8 + $0x38] sm:$0xff] %v363_v25 }
 0x116   :  { %383 = dma.vmem_to_hbm [thread:$0]  %s379_s2, 1024, %s381_s30, [#allocation4]  }
 0x117   :  { %497 = dma.done.wait [#allocation4], 1024  }
 0x118   :  { %498 = vsyncadd [#allocation4], 4294966272 }
 0x119   :  { %388 = vsyncpa [#allocation3], 1 }
 0x11a   :  { %389 = vsyncpa [#allocation6], 1 }
 0x11b   :  { %390 = vsyncpa [#allocation4], 1 }

</bundles_post_ra>
